<compile_context>
chip_gen: v6e
topology: v6e:2x2x1
jax: 0.10.0
libtpu: 0.0.40
codegen_flags: <defaults>
</compile_context>

<pallas_src>
import functools

import jax
import jax.numpy as jnp
from jax.experimental import pallas as pl
from jax.experimental.pallas import tpu as pltpu


def _fold_to_128(v):
    """Lane-wise fold (rows, w) -> (rows, 128). w must be a multiple of 128."""
    w = v.shape[-1]
    while w > 128:
        nb = w // 128
        lo_nb = (nb + 1) // 2            # front half (>= back half), in 128-chunks
        hi_nb = nb - lo_nb
        lo = v[:, : lo_nb * 128]
        hi = v[:, lo_nb * 128:]
        if hi_nb == lo_nb:               # even fold
            v = lo + hi
        else:                            # uneven fold: add hi onto lo's head
            v = jnp.concatenate(
                [lo[:, : hi_nb * 128] + hi, lo[:, hi_nb * 128:]], axis=-1)
        w = lo_nb * 128
    return v


def _partial_moments_kernel(x_ref, sum_ref, sq_ref, *, tm, hw, half, grid_j):
    """Accumulate per-row lane-wise sum / sum-of-squares for one row block."""
    j = pl.program_id(2)

    @pl.when(j == 0)
    def _():
        sum_ref[...] = jnp.zeros_like(sum_ref)
        sq_ref[...] = jnp.zeros_like(sq_ref)

    # Intended (unclamped) global column-tile index for this (core, step).
    gj = pl.program_id(0) * half + j
    block_end = (gj + 1) * tm

    def accumulate(blk):                           # blk: (rb, tm) f32
        sum_ref[...] += _fold_to_128(blk)[None]
        sq_ref[...] += _fold_to_128(blk * blk)[None]

    # Fast path: tile lies fully inside [0, hw) -- no masking work at all.
    @pl.when(block_end <= hw)
    def _():
        accumulate(x_ref[...].astype(jnp.float32))

    # Cold path: tail tile (partial) or phantom tile (gj >= grid_j, fully
    # masked -- its DMA was clamped to the last real tile, so zero it out).
    @pl.when(block_end > hw)
    def _():
        blk = x_ref[...].astype(jnp.float32)
        col = gj * tm + jax.lax.broadcasted_iota(jnp.int32, blk.shape, 1)
        accumulate(jnp.where(col < hw, blk, 0.0))


def _pick_rows(rows, cap=64):
    """Row-block size: multiple of 8 (or full extent) that divides `rows`."""
    if rows <= cap:
        return rows                       # full-extent block is always legal
    for rb in range(cap - cap % 8, 7, -8):
        if rows % rb == 0:
            return rb
    return rows                           # fallback: one full-extent block


def _pick_tile(hw, rb, itemsize, cap_bytes):
    """Column tile: any multiple of 128 (no pow2 overshoot), ~cap_bytes/step."""
    chunks = pl.cdiv(hw, 128)                              # 128-lane chunks
    cap_chunks = max(1, (cap_bytes // (rb * itemsize)) // 128)
    grid_j = pl.cdiv(chunks, cap_chunks)
    tm = 128 * pl.cdiv(chunks, grid_j)                     # evenly distributed
    return tm, grid_j


def fake_color_distribution(x, norm_mean, norm_std, *, tile_bytes=2 << 20):
    """x: NCHW array (any float/int dtype). norm_mean / norm_std: (C,)."""
    n, c, h, w = x.shape
    hw = h * w
    rows = n * c
    xv = x.reshape(rows, hw)              # free reshape -- no NCHW->CNHW copy

    itemsize = jnp.dtype(x.dtype).itemsize
    rb = _pick_rows(rows)
    tm, grid_j = _pick_tile(hw, rb, itemsize, tile_bytes)
    grid_r = rows // rb
    half = pl.cdiv(grid_j, 2)             # column tiles per megacore half

    kernel = functools.partial(_partial_moments_kernel, tm=tm, hw=hw,
                               half=half, grid_j=grid_j)

    cost = pl.CostEstimate(
        flops=int(4 * rows * hw),
        transcendentals=0,
        bytes_accessed=int(rows * hw * itemsize + 2 * 2 * rows * 128 * 4),
    )

    # VMEM: double-buffered input tile + lane-dense partial outputs + headroom.
    vmem_limit = int(2 * rb * tm * itemsize + 4 * rb * 128 * 4 + (16 << 20))

    sum_part, sq_part = pl.pallas_call(
        kernel,
        out_shape=(jax.ShapeDtypeStruct((2, rows, 128), jnp.float32),
                   jax.ShapeDtypeStruct((2, rows, 128), jnp.float32)),
        grid_spec=pltpu.PrefetchScalarGridSpec(
            num_scalar_prefetch=0,
            grid=(2, grid_r, half),
            in_specs=[pl.BlockSpec(
                (rb, tm),
                # Clamp phantom tiles onto the last real tile (kernel masks
                # them to zero), keeping the auto-DMA in bounds.
                lambda p, r, j: (r, jnp.minimum(p * half + j, grid_j - 1)))],
            out_specs=[pl.BlockSpec((1, rb, 128), lambda p, r, j: (p, r, 0)),
                       pl.BlockSpec((1, rb, 128), lambda p, r, j: (p, r, 0))],
        ),
        compiler_params=pltpu.CompilerParams(
            dimension_semantics=("parallel", "parallel", "arbitrary"),
            vmem_limit_bytes=vmem_limit),
        cost_estimate=cost,
    )(xv)

    # Tiny finalize in JAX: reduce core/lane/image partials, then mean/std/L2.
    m = jnp.float32(n * hw)
    row_sum = jnp.sum(sum_part, axis=(0, 2))               # (N*C,)
    row_sq = jnp.sum(sq_part, axis=(0, 2))                 # (N*C,)
    ch_sum = row_sum.reshape(n, c).sum(0)                  # (C,)
    ch_sq = row_sq.reshape(n, c).sum(0)                    # (C,)
    mean = ch_sum / m
    var = jnp.maximum(ch_sq / m - mean * mean, 0.0)        # E[x^2] - E[x]^2
    std = jnp.sqrt(var)                                    # unbiased=False
    mean_loss = jnp.linalg.norm(mean - norm_mean.reshape(-1).astype(jnp.float32))
    std_loss = jnp.linalg.norm(std - norm_std.reshape(-1).astype(jnp.float32))
    return mean_loss + std_loss


def _reference(x, norm_mean, norm_std):
    n, c, h, w = x.shape
    view = jnp.transpose(x, (1, 0, 2, 3)).reshape(c, -1).astype(jnp.float32)
    mean = view.mean(-1)
    std = view.std(-1)  # jnp default ddof=0 == unbiased=False
    mean_loss = jnp.linalg.norm(mean - norm_mean.reshape(-1))
    std_loss = jnp.linalg.norm(std - norm_std.reshape(-1))
    return mean_loss + std_loss


if __name__ == "__main__":
    key = jax.random.PRNGKey(0)
    N, C, H, W = 2, 4, 16, 16
    x = jax.random.uniform(key, (N, C, H, W), dtype=jnp.float32)

    # Deterministic "Normalizer" parameters (per-channel mean / std).
    norm_mean = jnp.array([0.485, 0.456, 0.406, 0.500], dtype=jnp.float32)
    norm_std = jnp.array([0.229, 0.224, 0.225, 0.250], dtype=jnp.float32)

    loss = jax.jit(fake_color_distribution)(x, norm_mean, norm_std)
    loss = jax.block_until_ready(loss)

    ref = _reference(x, norm_mean, norm_std)
    assert jnp.allclose(loss, ref, rtol=1e-5, atol=1e-5), (loss, ref)

    print("KERNEL_OK")
</pallas_src>

<mosaic_0001>
module attributes {stable_mosaic.version = 11 : i64} {
  func.func @_partial_moments_kernel(%arg0: i32, %arg1: i32, %arg2: i32, %arg3: memref<8x256xf32, #tpu.memory_space<vmem>>, %arg4: memref<1x8x128xf32, #tpu.memory_space<vmem>>, %arg5: memref<1x8x128xf32, #tpu.memory_space<vmem>>) attributes {dimension_semantics = [#tpu.dimension_semantics<parallel>, #tpu.dimension_semantics<parallel>, #tpu.dimension_semantics<arbitrary>], iteration_bounds = array<i64: 2, 1, 1>, scalar_prefetch = 0 : i64, scratch_operands = 0 : i64, tpu.core_type = #tpu.core_type<tc>, window_params = [{transform_indices = @transform_0, window_bounds = array<i64: 8, 256>}, {transform_indices = @transform_1, window_bounds = array<i64: 1, 8, 128>}, {transform_indices = @transform_2, window_bounds = array<i64: 1, 8, 128>}]} {
    %c0_i32 = arith.constant 0 : i32
    %0 = arith.cmpi eq, %arg2, %c0_i32 : i32
    %1 = arith.extui %0 : i1 to i32
    %c0_i32_0 = arith.constant 0 : i32
    %2 = arith.cmpi ne, %1, %c0_i32_0 : i32
    scf.if %2 {
      %cst = arith.constant 0.000000e+00 : f32
      %13 = vector.broadcast %cst : f32 to vector<1x8x128xf32>
      %c0 = arith.constant 0 : index
      %c0_6 = arith.constant 0 : index
      %c0_7 = arith.constant 0 : index
      %14 = vector.load %arg4[%c0, %c0_6, %c0_7] : memref<1x8x128xf32, #tpu.memory_space<vmem>>, vector<1x8x128xf32>
      tpu.vector_store %arg4[%c0, %c0_6, %c0_7], %13 {strides = array<i32>} : memref<1x8x128xf32, #tpu.memory_space<vmem>>, vector<1x8x128xf32>,
      %cst_8 = arith.constant 0.000000e+00 : f32
      %15 = vector.broadcast %cst_8 : f32 to vector<1x8x128xf32>
      %c0_9 = arith.constant 0 : index
      %c0_10 = arith.constant 0 : index
      %c0_11 = arith.constant 0 : index
      %16 = vector.load %arg5[%c0_9, %c0_10, %c0_11] : memref<1x8x128xf32, #tpu.memory_space<vmem>>, vector<1x8x128xf32>
      tpu.vector_store %arg5[%c0_9, %c0_10, %c0_11], %15 {strides = array<i32>} : memref<1x8x128xf32, #tpu.memory_space<vmem>>, vector<1x8x128xf32>,
    } else {
    }
    %c1_i32 = arith.constant 1 : i32
    %3 = arith.muli %arg0, %c1_i32 : i32
    %4 = arith.addi %3, %arg2 : i32
    %c1_i32_1 = arith.constant 1 : i32
    %5 = arith.addi %4, %c1_i32_1 : i32
    %c256_i32 = arith.constant 256 : i32
    %6 = arith.muli %5, %c256_i32 : i32
    %c256_i32_2 = arith.constant 256 : i32
    %7 = arith.cmpi sle, %6, %c256_i32_2 : i32
    %8 = arith.extui %7 : i1 to i32
    %c0_i32_3 = arith.constant 0 : i32
    %9 = arith.cmpi ne, %8, %c0_i32_3 : i32
    scf.if %9 {
      %c0 = arith.constant 0 : index
      %c0_6 = arith.constant 0 : index
      %13 = vector.load %arg3[%c0, %c0_6] : memref<8x256xf32, #tpu.memory_space<vmem>>, vector<8x256xf32>
      %c0_7 = arith.constant 0 : index
      %c0_8 = arith.constant 0 : index
      %c0_9 = arith.constant 0 : index
      %14 = vector.load %arg4[%c0_7, %c0_8, %c0_9] : memref<1x8x128xf32, #tpu.memory_space<vmem>>, vector<1x8x128xf32>
      %15 = vector.extract_strided_slice %13 {offsets = [0, 0], sizes = [8, 128], strides = [1, 1]} : vector<8x256xf32> to vector<8x128xf32>
      %16 = vector.extract_strided_slice %13 {offsets = [0, 128], sizes = [8, 128], strides = [1, 1]} : vector<8x256xf32> to vector<8x128xf32>
      %17 = arith.addf %15, %16 : vector<8x128xf32>
      %18 = vector.shape_cast %17 : vector<8x128xf32> to vector<1x8x128xf32>
      %19 = arith.addf %14, %18 : vector<1x8x128xf32>
      %c0_10 = arith.constant 0 : index
      %c0_11 = arith.constant 0 : index
      %c0_12 = arith.constant 0 : index
      %20 = vector.load %arg4[%c0_10, %c0_11, %c0_12] : memref<1x8x128xf32, #tpu.memory_space<vmem>>, vector<1x8x128xf32>
      tpu.vector_store %arg4[%c0_10, %c0_11, %c0_12], %19 {strides = array<i32>} : memref<1x8x128xf32, #tpu.memory_space<vmem>>, vector<1x8x128xf32>,
      %c0_13 = arith.constant 0 : index
      %c0_14 = arith.constant 0 : index
      %c0_15 = arith.constant 0 : index
      %21 = vector.load %arg5[%c0_13, %c0_14, %c0_15] : memref<1x8x128xf32, #tpu.memory_space<vmem>>, vector<1x8x128xf32>
      %22 = arith.mulf %13, %13 : vector<8x256xf32>
      %23 = vector.extract_strided_slice %22 {offsets = [0, 0], sizes = [8, 128], strides = [1, 1]} : vector<8x256xf32> to vector<8x128xf32>
      %24 = vector.extract_strided_slice %22 {offsets = [0, 128], sizes = [8, 128], strides = [1, 1]} : vector<8x256xf32> to vector<8x128xf32>
      %25 = arith.addf %23, %24 : vector<8x128xf32>
      %26 = vector.shape_cast %25 : vector<8x128xf32> to vector<1x8x128xf32>
      %27 = arith.addf %21, %26 : vector<1x8x128xf32>
      %c0_16 = arith.constant 0 : index
      %c0_17 = arith.constant 0 : index
      %c0_18 = arith.constant 0 : index
      %28 = vector.load %arg5[%c0_16, %c0_17, %c0_18] : memref<1x8x128xf32, #tpu.memory_space<vmem>>, vector<1x8x128xf32>
      tpu.vector_store %arg5[%c0_16, %c0_17, %c0_18], %27 {strides = array<i32>} : memref<1x8x128xf32, #tpu.memory_space<vmem>>, vector<1x8x128xf32>,
    } else {
    }
    %c256_i32_4 = arith.constant 256 : i32
    %10 = arith.cmpi sgt, %6, %c256_i32_4 : i32
    %11 = arith.extui %10 : i1 to i32
    %c0_i32_5 = arith.constant 0 : i32
    %12 = arith.cmpi ne, %11, %c0_i32_5 : i32
    scf.if %12 {
      %c0 = arith.constant 0 : index
      %c0_6 = arith.constant 0 : index
      %13 = vector.load %arg3[%c0, %c0_6] : memref<8x256xf32, #tpu.memory_space<vmem>>, vector<8x256xf32>
      %c256_i32_7 = arith.constant 256 : i32
      %14 = arith.muli %4, %c256_i32_7 : i32
      %15 = tpu.iota {dimensions = array<i32: 1>} : vector<8x256xi32>
      %16 = vector.broadcast %14 : i32 to vector<8x256xi32>
      %17 = arith.addi %16, %15 : vector<8x256xi32>
      %c256_i32_8 = arith.constant 256 : i32
      %18 = vector.broadcast %c256_i32_8 : i32 to vector<8x256xi32>
      %19 = arith.cmpi slt, %17, %18 : vector<8x256xi32>
      %cst = arith.constant 0.000000e+00 : f32
      %20 = vector.broadcast %cst : f32 to vector<8x256xf32>
      %21 = arith.select %19, %13, %20 : vector<8x256xi1>, vector<8x256xf32>
      %c0_9 = arith.constant 0 : index
      %c0_10 = arith.constant 0 : index
      %c0_11 = arith.constant 0 : index
      %22 = vector.load %arg4[%c0_9, %c0_10, %c0_11] : memref<1x8x128xf32, #tpu.memory_space<vmem>>, vector<1x8x128xf32>
      %23 = vector.extract_strided_slice %21 {offsets = [0, 0], sizes = [8, 128], strides = [1, 1]} : vector<8x256xf32> to vector<8x128xf32>
      %24 = vector.extract_strided_slice %21 {offsets = [0, 128], sizes = [8, 128], strides = [1, 1]} : vector<8x256xf32> to vector<8x128xf32>
      %25 = arith.addf %23, %24 : vector<8x128xf32>
      %26 = vector.shape_cast %25 : vector<8x128xf32> to vector<1x8x128xf32>
      %27 = arith.addf %22, %26 : vector<1x8x128xf32>
      %c0_12 = arith.constant 0 : index
      %c0_13 = arith.constant 0 : index
      %c0_14 = arith.constant 0 : index
      %28 = vector.load %arg4[%c0_12, %c0_13, %c0_14] : memref<1x8x128xf32, #tpu.memory_space<vmem>>, vector<1x8x128xf32>
      tpu.vector_store %arg4[%c0_12, %c0_13, %c0_14], %27 {strides = array<i32>} : memref<1x8x128xf32, #tpu.memory_space<vmem>>, vector<1x8x128xf32>,
      %c0_15 = arith.constant 0 : index
      %c0_16 = arith.constant 0 : index
      %c0_17 = arith.constant 0 : index
      %29 = vector.load %arg5[%c0_15, %c0_16, %c0_17] : memref<1x8x128xf32, #tpu.memory_space<vmem>>, vector<1x8x128xf32>
      %30 = arith.mulf %21, %21 : vector<8x256xf32>
      %31 = vector.extract_strided_slice %30 {offsets = [0, 0], sizes = [8, 128], strides = [1, 1]} : vector<8x256xf32> to vector<8x128xf32>
      %32 = vector.extract_strided_slice %30 {offsets = [0, 128], sizes = [8, 128], strides = [1, 1]} : vector<8x256xf32> to vector<8x128xf32>
      %33 = arith.addf %31, %32 : vector<8x128xf32>
      %34 = vector.shape_cast %33 : vector<8x128xf32> to vector<1x8x128xf32>
      %35 = arith.addf %29, %34 : vector<1x8x128xf32>
      %c0_18 = arith.constant 0 : index
      %c0_19 = arith.constant 0 : index
      %c0_20 = arith.constant 0 : index
      %36 = vector.load %arg5[%c0_18, %c0_19, %c0_20] : memref<1x8x128xf32, #tpu.memory_space<vmem>>, vector<1x8x128xf32>
      tpu.vector_store %arg5[%c0_18, %c0_19, %c0_20], %35 {strides = array<i32>} : memref<1x8x128xf32, #tpu.memory_space<vmem>>, vector<1x8x128xf32>,
    } else {
    }
    return
  }
  func.func @transform_0(%arg0: i32, %arg1: i32, %arg2: i32) -> (i32, i32) {
    %c1_i32 = arith.constant 1 : i32
    %0 = arith.muli %arg0, %c1_i32 : i32
    %1 = arith.addi %0, %arg2 : i32
    %c0_i32 = arith.constant 0 : i32
    %2 = arith.minsi %1, %c0_i32 : i32
    %c0_i32_0 = arith.constant 0 : i32
    return %arg1, %2 : i32, i32
  }
  func.func @transform_1(%arg0: i32, %arg1: i32, %arg2: i32) -> (i32, i32, i32) {
    %c0_i32 = arith.constant 0 : i32
    %c0_i32_0 = arith.constant 0 : i32
    return %arg0, %arg1, %c0_i32 : i32, i32, i32
  }
  func.func @transform_2(%arg0: i32, %arg1: i32, %arg2: i32) -> (i32, i32, i32) {
    %c0_i32 = arith.constant 0 : i32
    %c0_i32_0 = arith.constant 0 : i32
    return %arg0, %arg1, %c0_i32 : i32, i32, i32
  }
}

</mosaic_0001>

<bundles_post_ra>
// kernel: fake_color_distribution.1
= control target key start
LH: loop header
LB: loop body
LE: loop exit
PB: predicated region body
PF: predicated region fallthrough
CT: control target
= control target key end

     0   :  { %s480_s9 = smov 0   ;;  %s482_s10 = smov 0   ;;  %s541_s0 = inlined_call_operand.vmem [shape: f32[8,256], index: 0, kind: input, shape index: {}]   ;;  %s542_s1 = inlined_call_operand.vmem [shape: f32[2,8,128], index: 1, kind: output, shape index: {0}]   ;;  %s543_s2 = inlined_call_operand.vmem [shape: f32[2,8,128], index: 2, kind: output, shape index: {1}]  }
   0x1   :  { %s484_s11 = smov 0  }
   0x2 LB: > { %s32_s12 = sadd.s32 1, %s458_s10  ;;  %p402_p0 = scmp.ge.s32.totalorder %s462_s11, 1  ;;  %s462_s11 = sphi %s484_s11, %s13_s11   ;;  %s458_s10 = sphi %s482_s10, %s545_s10   ;;  %s454_s9 = sphi %s480_s9, %s544_s9  }
   0x3   : > { %p34_p1 = scmp.ge.s32.totalorder %s32_s12, 2  ;;  %p157_p2 = scmp.lt.s32.totalorder %s462_s11, 3 }
   0x5   : > { %s547_s12 = smov (%p34_p1, %s32_s12), 0  ;;  %p158_p3 = pnand %p402_p0, %p157_p2 }
   0x6   : > { %p196_p4 = scmp.lt.s32.totalorder (!%p158_p3), %s454_s9, 0  ;;  %p211_p5 = scmp.lt.s32.totalorder (!%p158_p3), %s454_s9, 1 }
   0x7   : > { %161 = sbr.rel (%p158_p3) target bundleno = 54 (0x36), region = 24  ;;  %s413_s13 = sshll.u32 (!%p158_p3), %s454_s9, 8 }
   0x8   : > { %s414_s17 = sadd.s32 (!%p158_p3), 256, %s413_s13 }
   0x9   : > { %p408_p7 = scmp.gt.s32.totalorder (!%p158_p3), %s414_s17, 256 }
   0xc   : > { %s197_s14 = scalar_select %p196_p4, %s454_s9, 0  ;;  %v464_v0 = vmov 0.0  }
   0xd   : > { %s212_s15 = scalar_select %p211_p5, %s454_s9, 1 }
   0xe   : > { %s403_s16 = sshll.u32 %s197_s14, 1 }
   0xf   : > { %p201_p6 = scmp.lt.s32.totalorder %s403_s16, 1  ;;  %s405_s18 = sshll.u32 %s212_s15, 3 }
  0x10   : > { %s510_s21 = scalar_lea.vmem %s542_s1, %s405_s18  ;;  %s515_s24 = scalar_lea.vmem %s543_s2, %s405_s18 }
  0x11   : > { %s549_s16 = smov (!%p201_p6, %s403_s16), 1  ;;  %229 = vst [vmem:[%s510_s21] sm:$0xff] %v464_v0  ;;  %230 = vst [vmem:[%s515_s24] sm:$0xff] %v464_v0  ;;  %237 = sbr.rel (%p408_p7) target bundleno = 30 (0x1e), region = 32 }
  0x12   : > { %s404_s25 = sshll.u32 %s549_s16, 3 }
  0x13   : > { %s206_s28 = scalar_lea.vmem %s541_s0, %s404_s25 }
  0x16   : > { %v238_v1 = vld [vmem:[%s206_s28] sm:$0xff]  ;;  %v239_v2 = vld [vmem:[%s206_s28 + $0x8] sm:$0xff] }
  0x17   : > { %v241_v4 = vadd.f32 %v239_v2, %v238_v1  ;;  %v245_v5 = vmul.f32 %v238_v1, %v238_v1  ;;  %v246_v6 = vmul.f32 %v239_v2, %v239_v2 }
  0x18   : > { %v240_v3 = vld [vmem:[%s510_s21] sm:$0xff] }
  0x19   : > { %v244_v7 = vld [vmem:[%s515_s24] sm:$0xff]  ;;  %v242_v8 = vadd.f32 %v241_v4, %v240_v3  ;;  %v247_v9 = vadd.f32 %v246_v6, %v245_v5 }
  0x1b   : > { %243 = vst [vmem:[%s510_s21] sm:$0xff] %v242_v8  ;;  %v248_v10 = vadd.f32 %v247_v9, %v244_v7 }
  0x1d   : > { %249 = vst [vmem:[%s515_s24] sm:$0xff] %v248_v10 }
  0x1e PF: > { %p409_p8 = scmp.le.s32.totalorder %s414_s17, 256 }
  0x20   : > { %253 = sbr.rel (%p409_p8) target bundleno = 54 (0x36), region = 36 }
  0x25   : > { %v257_v11 = vlaneseq  ;;  %v260_v12 = vstv %s413_s13  ;;  %v254_v14 = vld [vmem:[%s206_s28] sm:$0xff]  ;;  %v255_v17 = vld [vmem:[%s206_s28 + $0x8] sm:$0xff] }
  0x26   : > { %v267_v22 = vld [vmem:[%s510_s21] sm:$0xff] }
  0x27   : > { %v258_v13 = vand.u32 127, %v257_v11  ;;  %v271_v25 = vld [vmem:[%s515_s24] sm:$0xff] }
  0x29   : > { %v259_v15 = vadd.s32 128, %v258_v13  ;;  %v261_v16 = vadd.s32 %v260_v12, %v258_v13 }
  0x2b   : > { %v262_v18 = vadd.s32 %v260_v12, %v259_v15  ;;  %vm263_vm0 = vcmp.lt.s32.totalorder %v261_v16, 256 }
  0x2c   : > { %v265_v19 = vsel %vm263_vm0, %v254_v14, 0.0 }
  0x2d   : > { %vm264_vm1 = vcmp.lt.s32.totalorder %v262_v18, 256  ;;  %v272_v20 = vmul.f32 %v265_v19, %v265_v19 }
  0x2e   : > { %v266_v21 = vsel %vm264_vm1, %v255_v17, 0.0 }
  0x2f   : > { %v268_v23 = vadd.f32 %v266_v21, %v265_v19  ;;  %v273_v24 = vmul.f32 %v266_v21, %v266_v21 }
  0x31   : > { %v269_v26 = vadd.f32 %v268_v23, %v267_v22  ;;  %v274_v27 = vadd.f32 %v273_v24, %v272_v20 }
  0x33   : > { %270 = vst [vmem:[%s510_s21] sm:$0xff] %v269_v26  ;;  %v275_v28 = vadd.f32 %v274_v27, %v271_v25 }
  0x35   : > { %276 = vst [vmem:[%s515_s24] sm:$0xff] %v275_v28 }
  0x36 PF: > { %s13_s11 = sadd.s32 1, %s462_s11   ;;  %s544_s9 = smov %s458_s10 }
  0x37   : > { %p10_p9 = scmp.ge.s32.totalorder %s13_s11, 4   ;;  %s545_s10 = smov %s547_s12 }
  0x39   :  { %12 = sbr.rel (!%p10_p9) target bundleno = 2 (0x2), region = 78 }

</bundles_post_ra>
